<compile_context>
chip_gen: v5e
topology: v5e:2x2
jax: 0.10.0
libtpu: 0.0.40
codegen_flags: <defaults>
</compile_context>

<pallas_src>
import jax
import jax.numpy as jnp
import numpy as np
from jax.experimental import pallas as pl
from jax.experimental.pallas import tpu as pltpu

LANE = 128
MAX_BLOCK_ROWS = 2048          # 2048*128*4 B = 1 MiB per f32 stream per buffer
VMEM_LIMIT_BYTES = 32 << 20    # explicit scoped-VMEM budget, fits every gen


def _round_up(x, m):
    return ((x + m - 1) // m) * m


def _make_reduce_kernel(num_vals, has_mask, block_rows, rows, num_blocks):
    """Fused (optionally masked) sum-reduction kernel.

    Inputs : num_vals value tiles (+ optional mask tile), each (block_rows, LANE),
             dtype f32 or bf16 (upcast to f32 in-kernel, accumulated in f32).
    Output : SMEM f32[n_out] laid out as
      has_mask: [sum(v0), sum(v0*m), sum(v1), sum(v1*m), ..., sum(m)]
      else    : [sum(v0), sum(v1), ...]
    """
    n_in = num_vals + (1 if has_mask else 0)
    n_out = (2 * num_vals + 1) if has_mask else num_vals
    chunks = block_rows // 8
    needs_tail_mask = (rows % block_rows) != 0

    def kernel(*refs):
        in_refs = refs[:n_in]
        out_ref = refs[n_in]
        acc_ref = refs[n_in + 1]

        i = pl.program_id(0)

        @pl.when(i == 0)
        def _init():
            acc_ref[...] = jnp.zeros_like(acc_ref)

        def fold(slot, tile):
            # (block_rows, LANE) -> (chunks, 8, LANE) splits the sublane dim
            # along the native (8,128) tiling (layout-free); sum(axis=0) is a
            # short VPU add tree into a single-vreg accumulator slot.
            acc_ref[slot] += jnp.sum(tile.reshape(chunks, 8, LANE), axis=0)

        def body(masked):
            if masked:
                # Rows of the final (partial) block past the real data have
                # undefined VMEM contents -> select them to zero.  Row-only
                # test: any lane tail was zero-padded by the wrapper.
                row = jax.lax.broadcasted_iota(jnp.int32, (block_rows, LANE), 0)
                in_bounds = (i * block_rows + row) < rows
                zeros = jnp.zeros((block_rows, LANE), jnp.float32)
                sel = lambda t: jnp.where(in_bounds, t, zeros)
            else:
                sel = lambda t: t

            vals = [sel(in_refs[j][...].astype(jnp.float32))
                    for j in range(num_vals)]
            m = (sel(in_refs[num_vals][...].astype(jnp.float32))
                 if has_mask else None)

            slot = 0
            for j in range(num_vals):
                fold(slot, vals[j])
                slot += 1
                if has_mask:
                    fold(slot, vals[j] * m)
                    slot += 1
            if has_mask:
                fold(slot, m)

        if not needs_tail_mask:
            body(masked=False)           # every block is full: no bound mask at all
        elif num_blocks == 1:
            body(masked=True)            # single (partial) block
        else:
            @pl.when(i < num_blocks - 1)
            def _steady():
                body(masked=False)       # steady state: pure loads + mul/adds

            @pl.when(i == num_blocks - 1)
            def _tail():
                body(masked=True)        # remainder handling only on last block

        # Single cross-lane (XLU) reduction + scalar SMEM writes, once, at the end.
        @pl.when(i == num_blocks - 1)
        def _finalize():
            for s in range(n_out):
                out_ref[s] = jnp.sum(acc_ref[s])

    return kernel, n_out


def _fused_sums(values, mask=None):
    """values: list of flat [N] arrays (f32/bf16, same N); mask: optional [N] {0,1}.

    One Pallas pass returning f32 scalars in kernel output order:
      with mask : [sum(v0), sum(v0*m), sum(v1), sum(v1*m), ..., sum(m)]
      no mask   : [sum(v0), sum(v1), ...]
    """
    num_vals = len(values)
    has_mask = mask is not None
    n = int(values[0].shape[0])

    streams = list(values)
    if has_mask:
        streams.append(mask)

    # Align to the 128-lane width only if necessary (no-op for typical ray counts).
    # TODO(synk): route the lane tail through the in-kernel bound mask instead of
    # this pad copy when N % 128 != 0.
    pad = (-n) % LANE
    if pad:
        streams = [jnp.pad(s, (0, pad)) for s in streams]
    rows = (n + pad) // LANE
    streams = [s.reshape(rows, LANE) for s in streams]

    # block_rows multiple of 16 so both f32 (8,128) and bf16 (16,128) tiles fit.
    block_rows = min(MAX_BLOCK_ROWS, _round_up(rows, 16))
    num_blocks = int(pl.cdiv(rows, block_rows))

    kernel, n_out = _make_reduce_kernel(num_vals, has_mask, block_rows, rows,
                                        num_blocks)
    tile_spec = pl.BlockSpec((block_rows, LANE), lambda i: (i, 0))

    out = pl.pallas_call(
        kernel,
        out_shape=jax.ShapeDtypeStruct((n_out,), jnp.float32),
        grid_spec=pltpu.PrefetchScalarGridSpec(
            num_scalar_prefetch=0,
            grid=(num_blocks,),
            in_specs=[tile_spec] * len(streams),
            out_specs=pl.BlockSpec(memory_space=pltpu.MemorySpace.SMEM),
            scratch_shapes=[pltpu.VMEM((n_out, 8, LANE), jnp.float32)],
        ),
        compiler_params=pltpu.CompilerParams(
            dimension_semantics=("arbitrary",),
            vmem_limit_bytes=VMEM_LIMIT_BYTES),
    )(*streams)
    return [out[s] for s in range(n_out)]


def normal_loss(inputs, batch, coef=0.0001, normal_loss_only_inside_mirror=False,
                assume_mask_valid=True):
    """Pallas-backed equivalent of NormalLoss.forward.

    assume_mask_valid: True (default) skips the torch module's data-dependent
    "(mirror_mask < 0).any()" check (a device->host sync); pass None to run the
    exact check, or False to force the no-mask path.
    """
    keys = [f'normal_dif_{t}' for t in ('coarse', 'fine')
            if f'normal_dif_{t}' in inputs]
    if not keys:
        return jnp.float32(coef) * jnp.float32(0.0)

    # Keep f32/bf16 streams in their native dtype (bf16 halves HBM traffic);
    # anything else is cast to f32.  Accumulation in-kernel is always f32.
    vals = []
    for k in keys:
        v = jnp.asarray(inputs[k]).reshape(-1)
        if v.dtype not in (jnp.float32, jnp.bfloat16):
            v = v.astype(jnp.float32)
        vals.append(v)
    n = int(vals[0].shape[0])

    mirror_mask = None
    if 'mirror_mask' in batch:
        mm = jnp.asarray(batch['mirror_mask'])
        if assume_mask_valid is None:
            # Exact torch semantics: data-dependent validity check (host sync).
            mask_ok = not bool(jax.device_get(jnp.any(mm < 0)))
        else:
            mask_ok = bool(assume_mask_valid)
        if mask_ok:
            mask_dtype = (jnp.bfloat16
                          if all(v.dtype == jnp.bfloat16 for v in vals)
                          else jnp.float32)
            mirror_mask = jnp.squeeze(mm).reshape(-1).astype(mask_dtype)

    loss = jnp.float32(0.0)
    if mirror_mask is not None:
        sums = _fused_sums(vals, mirror_mask)          # single fused kernel call
        cnt_in = sums[-1]
        cnt_out = jnp.float32(n) - cnt_in
        # NOTE: cnt_in == 0 or cnt_out == 0 yields inf/nan, matching the torch
        # reference's mean over an empty boolean selection.
        for j in range(len(vals)):
            sum_v, sum_vm = sums[2 * j], sums[2 * j + 1]
            if not normal_loss_only_inside_mirror:
                loss = loss + (sum_v - sum_vm) / cnt_out            # mean over ~mask
            loss = loss + (sum_vm / cnt_in) * jnp.float32(100.0)    # mean over mask * 100
    else:
        sums = _fused_sums(vals)                       # single fused kernel call
        for j in range(len(vals)):
            loss = loss + sums[j] / jnp.float32(n)

    return jnp.float32(coef) * loss


if __name__ == "__main__":
    def ref_loss(vals_np, mask_np, coef=0.0001, only_inside=False):
        loss = 0.0
        if mask_np is not None:
            m = mask_np.squeeze().astype(bool)
            for a in vals_np:
                if not only_inside:
                    loss += a[~m].mean()
                loss += a[m].mean() * 100.0
        else:
            for a in vals_np:
                loss += a.mean()
        return np.float32(coef * loss)

    key = jax.random.PRNGKey(0)
    k1, k2, k3, k4, k5, k6, k7, k8, k9 = jax.random.split(key, 9)

    # Case 1: batch=2 of 16x16 rays -> N = 512 (lane-aligned), coarse+fine, f32.
    # assume_mask_valid=None also exercises the exact torch-style validity check.
    N1 = 512
    coarse1 = jax.random.uniform(k1, (N1,), dtype=jnp.float32)
    fine1 = jax.random.uniform(k2, (N1,), dtype=jnp.float32)
    mask1 = (jax.random.uniform(k3, (N1, 1)) > 0.5).astype(jnp.float32)
    inputs1 = {'normal_dif_coarse': coarse1, 'normal_dif_fine': fine1}

    loss1 = jax.block_until_ready(
        normal_loss(inputs1, {'mirror_mask': mask1}, assume_mask_valid=None))
    loss1_nomask = jax.block_until_ready(normal_loss(inputs1, {}))
    np.testing.assert_allclose(
        np.asarray(loss1),
        ref_loss([np.asarray(coarse1), np.asarray(fine1)], np.asarray(mask1)),
        rtol=1e-5, atol=1e-7)
    np.testing.assert_allclose(
        np.asarray(loss1_nomask),
        ref_loss([np.asarray(coarse1), np.asarray(fine1)], None),
        rtol=1e-5, atol=1e-7)

    # Case 2: N not lane/sublane aligned (remainder path), coarse only,
    # plus the normal_loss_only_inside_mirror variant.
    N2 = 1200
    coarse2 = jax.random.uniform(k4, (N2,), dtype=jnp.float32)
    mask2 = (jax.random.uniform(k5, (N2, 1)) > 0.3).astype(jnp.float32)
    inputs2 = {'normal_dif_coarse': coarse2}
    batch2 = {'mirror_mask': mask2}

    loss2 = jax.block_until_ready(normal_loss(inputs2, batch2))
    loss2_inside = jax.block_until_ready(
        normal_loss(inputs2, batch2, normal_loss_only_inside_mirror=True))
    np.testing.assert_allclose(
        np.asarray(loss2),
        ref_loss([np.asarray(coarse2)], np.asarray(mask2)),
        rtol=1e-5, atol=1e-7)
    np.testing.assert_allclose(
        np.asarray(loss2_inside),
        ref_loss([np.asarray(coarse2)], np.asarray(mask2), only_inside=True),
        rtol=1e-5, atol=1e-7)

    # Case 3: bf16 activations streamed as bf16 (upcast in-kernel, f32 accumulate).
    N3 = 5000
    coarse3 = jax.random.uniform(k6, (N3,), dtype=jnp.float32).astype(jnp.bfloat16)
    fine3 = jax.random.uniform(k7, (N3,), dtype=jnp.float32).astype(jnp.bfloat16)
    mask3 = (jax.random.uniform(k8, (N3, 1)) > 0.5).astype(jnp.float32)
    inputs3 = {'normal_dif_coarse': coarse3, 'normal_dif_fine': fine3}

    loss3 = jax.block_until_ready(normal_loss(inputs3, {'mirror_mask': mask3}))
    np.testing.assert_allclose(
        np.asarray(loss3),
        ref_loss([np.asarray(coarse3).astype(np.float32),
                  np.asarray(fine3).astype(np.float32)], np.asarray(mask3)),
        rtol=5e-4, atol=1e-6)

    # Case 4: multi-block grid (640x480 rays -> rows=2400 > block_rows=2048),
    # exercises the steady-state (unmasked) + tail (masked) pl.when split.
    N4 = 640 * 480
    coarse4 = jax.random.uniform(k9, (N4,), dtype=jnp.float32)
    fine4 = jax.random.uniform(k1, (N4,), dtype=jnp.float32)
    mask4 = (jax.random.uniform(k2, (N4, 1)) > 0.5).astype(jnp.float32)
    inputs4 = {'normal_dif_coarse': coarse4, 'normal_dif_fine': fine4}

    loss4 = jax.block_until_ready(normal_loss(inputs4, {'mirror_mask': mask4}))
    np.testing.assert_allclose(
        np.asarray(loss4),
        ref_loss([np.asarray(coarse4), np.asarray(fine4)], np.asarray(mask4)),
        rtol=2e-5, atol=1e-7)

    print("KERNEL_OK")
</pallas_src>

<mosaic_0001>
module attributes {stable_mosaic.version = 11 : i64} {
  func.func @kernel(%arg0: i32, %arg1: memref<16x128xf32, #tpu.memory_space<vmem>>, %arg2: memref<16x128xf32, #tpu.memory_space<vmem>>, %arg3: memref<16x128xf32, #tpu.memory_space<vmem>>, %arg4: memref<5xf32, #tpu.memory_space<smem>>, %arg5: memref<5x8x128xf32, #tpu.memory_space<vmem>>) attributes {dimension_semantics = [#tpu.dimension_semantics<arbitrary>], iteration_bounds = array<i64: 1>, scalar_prefetch = 0 : i64, scratch_operands = 1 : i64, tpu.core_type = #tpu.core_type<tc>, window_params = [{transform_indices = @transform_0, window_bounds = array<i64: 16, 128>}, {transform_indices = @transform_1, window_bounds = array<i64: 16, 128>}, {transform_indices = @transform_2, window_bounds = array<i64: 16, 128>}, {transform_indices = @transform_3, window_bounds = array<i64: 5>}]} {
    %c0_i32 = arith.constant 0 : i32
    %0 = arith.cmpi eq, %arg0, %c0_i32 : i32
    %1 = arith.extui %0 : i1 to i32
    %c0_i32_0 = arith.constant 0 : i32
    %2 = arith.cmpi ne, %1, %c0_i32_0 : i32
    scf.if %2 {
      %cst_39 = arith.constant 0.000000e+00 : f32
      %61 = vector.broadcast %cst_39 : f32 to vector<5x8x128xf32>
      %c0_40 = arith.constant 0 : index
      %c0_41 = arith.constant 0 : index
      %c0_42 = arith.constant 0 : index
      %62 = vector.load %arg5[%c0_40, %c0_41, %c0_42] : memref<5x8x128xf32, #tpu.memory_space<vmem>>, vector<5x8x128xf32>
      tpu.vector_store %arg5[%c0_40, %c0_41, %c0_42], %61 {strides = array<i32>} : memref<5x8x128xf32, #tpu.memory_space<vmem>>, vector<5x8x128xf32>,
    } else {
    }
    %3 = tpu.iota {dimensions = array<i32: 0>} : vector<16x128xi32>
    %c16_i32 = arith.constant 16 : i32
    %4 = arith.muli %arg0, %c16_i32 : i32
    %5 = vector.broadcast %4 : i32 to vector<16x128xi32>
    %6 = arith.addi %5, %3 : vector<16x128xi32>
    %c4_i32 = arith.constant 4 : i32
    %7 = vector.broadcast %c4_i32 : i32 to vector<16x128xi32>
    %8 = arith.cmpi slt, %6, %7 : vector<16x128xi32>
    %cst = arith.constant 0.000000e+00 : f32
    %9 = vector.broadcast %cst : f32 to vector<16x128xf32>
    %c0 = arith.constant 0 : index
    %c0_1 = arith.constant 0 : index
    %10 = vector.load %arg1[%c0, %c0_1] : memref<16x128xf32, #tpu.memory_space<vmem>>, vector<16x128xf32>
    %11 = arith.select %8, %10, %9 : vector<16x128xi1>, vector<16x128xf32>
    %c0_2 = arith.constant 0 : index
    %c0_3 = arith.constant 0 : index
    %12 = vector.load %arg2[%c0_2, %c0_3] : memref<16x128xf32, #tpu.memory_space<vmem>>, vector<16x128xf32>
    %13 = arith.select %8, %12, %9 : vector<16x128xi1>, vector<16x128xf32>
    %c0_4 = arith.constant 0 : index
    %c0_5 = arith.constant 0 : index
    %14 = vector.load %arg3[%c0_4, %c0_5] : memref<16x128xf32, #tpu.memory_space<vmem>>, vector<16x128xf32>
    %15 = arith.select %8, %14, %9 : vector<16x128xi1>, vector<16x128xf32>
    %c0_6 = arith.constant 0 : index
    %c0_7 = arith.constant 0 : index
    %c0_8 = arith.constant 0 : index
    %16 = vector.load %arg5[%c0_6, %c0_7, %c0_8] : memref<5x8x128xf32, #tpu.memory_space<vmem>>, vector<1x8x128xf32>
    %17 = vector.shape_cast %16 : vector<1x8x128xf32> to vector<8x128xf32>
    %18 = vector.shape_cast %11 : vector<16x128xf32> to vector<2x8x128xf32>
    %cst_9 = arith.constant dense<0.000000e+00> : vector<8x128xf32>
    %19 = vector.multi_reduction <add>, %18, %cst_9 [0] : vector<2x8x128xf32> to vector<8x128xf32>
    %20 = arith.addf %17, %19 : vector<8x128xf32>
    %c0_10 = arith.constant 0 : index
    %c0_11 = arith.constant 0 : index
    %c0_12 = arith.constant 0 : index
    %21 = vector.load %arg5[%c0_10, %c0_11, %c0_12] : memref<5x8x128xf32, #tpu.memory_space<vmem>>, vector<1x8x128xf32>
    %22 = vector.shape_cast %21 : vector<1x8x128xf32> to vector<8x128xf32>
    %23 = vector.shape_cast %20 : vector<8x128xf32> to vector<1x8x128xf32>
    tpu.vector_store %arg5[%c0_10, %c0_11, %c0_12], %23 {strides = array<i32>} : memref<5x8x128xf32, #tpu.memory_space<vmem>>, vector<1x8x128xf32>,
    %24 = arith.mulf %11, %15 : vector<16x128xf32>
    %c1 = arith.constant 1 : index
    %c0_13 = arith.constant 0 : index
    %c0_14 = arith.constant 0 : index
    %25 = vector.load %arg5[%c1, %c0_13, %c0_14] : memref<5x8x128xf32, #tpu.memory_space<vmem>>, vector<1x8x128xf32>
    %26 = vector.shape_cast %25 : vector<1x8x128xf32> to vector<8x128xf32>
    %27 = vector.shape_cast %24 : vector<16x128xf32> to vector<2x8x128xf32>
    %cst_15 = arith.constant dense<0.000000e+00> : vector<8x128xf32>
    %28 = vector.multi_reduction <add>, %27, %cst_15 [0] : vector<2x8x128xf32> to vector<8x128xf32>
    %29 = arith.addf %26, %28 : vector<8x128xf32>
    %c1_16 = arith.constant 1 : index
    %c0_17 = arith.constant 0 : index
    %c0_18 = arith.constant 0 : index
    %30 = vector.load %arg5[%c1_16, %c0_17, %c0_18] : memref<5x8x128xf32, #tpu.memory_space<vmem>>, vector<1x8x128xf32>
    %31 = vector.shape_cast %30 : vector<1x8x128xf32> to vector<8x128xf32>
    %32 = vector.shape_cast %29 : vector<8x128xf32> to vector<1x8x128xf32>
    tpu.vector_store %arg5[%c1_16, %c0_17, %c0_18], %32 {strides = array<i32>} : memref<5x8x128xf32, #tpu.memory_space<vmem>>, vector<1x8x128xf32>,
    %c2 = arith.constant 2 : index
    %c0_19 = arith.constant 0 : index
    %c0_20 = arith.constant 0 : index
    %33 = vector.load %arg5[%c2, %c0_19, %c0_20] : memref<5x8x128xf32, #tpu.memory_space<vmem>>, vector<1x8x128xf32>
    %34 = vector.shape_cast %33 : vector<1x8x128xf32> to vector<8x128xf32>
    %35 = vector.shape_cast %13 : vector<16x128xf32> to vector<2x8x128xf32>
    %cst_21 = arith.constant dense<0.000000e+00> : vector<8x128xf32>
    %36 = vector.multi_reduction <add>, %35, %cst_21 [0] : vector<2x8x128xf32> to vector<8x128xf32>
    %37 = arith.addf %34, %36 : vector<8x128xf32>
    %c2_22 = arith.constant 2 : index
    %c0_23 = arith.constant 0 : index
    %c0_24 = arith.constant 0 : index
    %38 = vector.load %arg5[%c2_22, %c0_23, %c0_24] : memref<5x8x128xf32, #tpu.memory_space<vmem>>, vector<1x8x128xf32>
    %39 = vector.shape_cast %38 : vector<1x8x128xf32> to vector<8x128xf32>
    %40 = vector.shape_cast %37 : vector<8x128xf32> to vector<1x8x128xf32>
    tpu.vector_store %arg5[%c2_22, %c0_23, %c0_24], %40 {strides = array<i32>} : memref<5x8x128xf32, #tpu.memory_space<vmem>>, vector<1x8x128xf32>,
    %41 = arith.mulf %13, %15 : vector<16x128xf32>
    %c3 = arith.constant 3 : index
    %c0_25 = arith.constant 0 : index
    %c0_26 = arith.constant 0 : index
    %42 = vector.load %arg5[%c3, %c0_25, %c0_26] : memref<5x8x128xf32, #tpu.memory_space<vmem>>, vector<1x8x128xf32>
    %43 = vector.shape_cast %42 : vector<1x8x128xf32> to vector<8x128xf32>
    %44 = vector.shape_cast %41 : vector<16x128xf32> to vector<2x8x128xf32>
    %cst_27 = arith.constant dense<0.000000e+00> : vector<8x128xf32>
    %45 = vector.multi_reduction <add>, %44, %cst_27 [0] : vector<2x8x128xf32> to vector<8x128xf32>
    %46 = arith.addf %43, %45 : vector<8x128xf32>
    %c3_28 = arith.constant 3 : index
    %c0_29 = arith.constant 0 : index
    %c0_30 = arith.constant 0 : index
    %47 = vector.load %arg5[%c3_28, %c0_29, %c0_30] : memref<5x8x128xf32, #tpu.memory_space<vmem>>, vector<1x8x128xf32>
    %48 = vector.shape_cast %47 : vector<1x8x128xf32> to vector<8x128xf32>
    %49 = vector.shape_cast %46 : vector<8x128xf32> to vector<1x8x128xf32>
    tpu.vector_store %arg5[%c3_28, %c0_29, %c0_30], %49 {strides = array<i32>} : memref<5x8x128xf32, #tpu.memory_space<vmem>>, vector<1x8x128xf32>,
    %c4 = arith.constant 4 : index
    %c0_31 = arith.constant 0 : index
    %c0_32 = arith.constant 0 : index
    %50 = vector.load %arg5[%c4, %c0_31, %c0_32] : memref<5x8x128xf32, #tpu.memory_space<vmem>>, vector<1x8x128xf32>
    %51 = vector.shape_cast %50 : vector<1x8x128xf32> to vector<8x128xf32>
    %52 = vector.shape_cast %15 : vector<16x128xf32> to vector<2x8x128xf32>
    %cst_33 = arith.constant dense<0.000000e+00> : vector<8x128xf32>
    %53 = vector.multi_reduction <add>, %52, %cst_33 [0] : vector<2x8x128xf32> to vector<8x128xf32>
    %54 = arith.addf %51, %53 : vector<8x128xf32>
    %c4_34 = arith.constant 4 : index
    %c0_35 = arith.constant 0 : index
    %c0_36 = arith.constant 0 : index
    %55 = vector.load %arg5[%c4_34, %c0_35, %c0_36] : memref<5x8x128xf32, #tpu.memory_space<vmem>>, vector<1x8x128xf32>
    %56 = vector.shape_cast %55 : vector<1x8x128xf32> to vector<8x128xf32>
    %57 = vector.shape_cast %54 : vector<8x128xf32> to vector<1x8x128xf32>
    tpu.vector_store %arg5[%c4_34, %c0_35, %c0_36], %57 {strides = array<i32>} : memref<5x8x128xf32, #tpu.memory_space<vmem>>, vector<1x8x128xf32>,
    %c0_i32_37 = arith.constant 0 : i32
    %58 = arith.cmpi eq, %arg0, %c0_i32_37 : i32
    %59 = arith.extui %58 : i1 to i32
    %c0_i32_38 = arith.constant 0 : i32
    %60 = arith.cmpi ne, %59, %c0_i32_38 : i32
    scf.if %60 {
      %c0_39 = arith.constant 0 : index
      %c0_40 = arith.constant 0 : index
      %c0_41 = arith.constant 0 : index
      %61 = vector.load %arg5[%c0_39, %c0_40, %c0_41] : memref<5x8x128xf32, #tpu.memory_space<vmem>>, vector<1x8x128xf32>
      %62 = vector.shape_cast %61 : vector<1x8x128xf32> to vector<8x128xf32>
      %63 = vector.shape_cast %62 : vector<8x128xf32> to vector<1x8x128xf32>
      %cst_42 = arith.constant dense<0.000000e+00> : vector<1xf32>
      %64 = vector.multi_reduction <add>, %63, %cst_42 [1, 2] : vector<1x8x128xf32> to vector<1xf32>
      %65 = vector.shape_cast %64 : vector<1xf32> to vector<1x1x1xf32>
      %66 = vector.extract %65[0, 0, 0] : f32 from vector<1x1x1xf32>
      %c0_43 = arith.constant 0 : index
      %67 = memref.load %arg4[%c0_43] : memref<5xf32, #tpu.memory_space<smem>>
      memref.store %66, %arg4[%c0_43] : memref<5xf32, #tpu.memory_space<smem>>
      %c1_44 = arith.constant 1 : index
      %c0_45 = arith.constant 0 : index
      %c0_46 = arith.constant 0 : index
      %68 = vector.load %arg5[%c1_44, %c0_45, %c0_46] : memref<5x8x128xf32, #tpu.memory_space<vmem>>, vector<1x8x128xf32>
      %69 = vector.shape_cast %68 : vector<1x8x128xf32> to vector<8x128xf32>
      %70 = vector.shape_cast %69 : vector<8x128xf32> to vector<1x8x128xf32>
      %cst_47 = arith.constant dense<0.000000e+00> : vector<1xf32>
      %71 = vector.multi_reduction <add>, %70, %cst_47 [1, 2] : vector<1x8x128xf32> to vector<1xf32>
      %72 = vector.shape_cast %71 : vector<1xf32> to vector<1x1x1xf32>
      %73 = vector.extract %72[0, 0, 0] : f32 from vector<1x1x1xf32>
      %c1_48 = arith.constant 1 : index
      %74 = memref.load %arg4[%c1_48] : memref<5xf32, #tpu.memory_space<smem>>
      memref.store %73, %arg4[%c1_48] : memref<5xf32, #tpu.memory_space<smem>>
      %c2_49 = arith.constant 2 : index
      %c0_50 = arith.constant 0 : index
      %c0_51 = arith.constant 0 : index
      %75 = vector.load %arg5[%c2_49, %c0_50, %c0_51] : memref<5x8x128xf32, #tpu.memory_space<vmem>>, vector<1x8x128xf32>
      %76 = vector.shape_cast %75 : vector<1x8x128xf32> to vector<8x128xf32>
      %77 = vector.shape_cast %76 : vector<8x128xf32> to vector<1x8x128xf32>
      %cst_52 = arith.constant dense<0.000000e+00> : vector<1xf32>
      %78 = vector.multi_reduction <add>, %77, %cst_52 [1, 2] : vector<1x8x128xf32> to vector<1xf32>
      %79 = vector.shape_cast %78 : vector<1xf32> to vector<1x1x1xf32>
      %80 = vector.extract %79[0, 0, 0] : f32 from vector<1x1x1xf32>
      %c2_53 = arith.constant 2 : index
      %81 = memref.load %arg4[%c2_53] : memref<5xf32, #tpu.memory_space<smem>>
      memref.store %80, %arg4[%c2_53] : memref<5xf32, #tpu.memory_space<smem>>
      %c3_54 = arith.constant 3 : index
      %c0_55 = arith.constant 0 : index
      %c0_56 = arith.constant 0 : index
      %82 = vector.load %arg5[%c3_54, %c0_55, %c0_56] : memref<5x8x128xf32, #tpu.memory_space<vmem>>, vector<1x8x128xf32>
      %83 = vector.shape_cast %82 : vector<1x8x128xf32> to vector<8x128xf32>
      %84 = vector.shape_cast %83 : vector<8x128xf32> to vector<1x8x128xf32>
      %cst_57 = arith.constant dense<0.000000e+00> : vector<1xf32>
      %85 = vector.multi_reduction <add>, %84, %cst_57 [1, 2] : vector<1x8x128xf32> to vector<1xf32>
      %86 = vector.shape_cast %85 : vector<1xf32> to vector<1x1x1xf32>
      %87 = vector.extract %86[0, 0, 0] : f32 from vector<1x1x1xf32>
      %c3_58 = arith.constant 3 : index
      %88 = memref.load %arg4[%c3_58] : memref<5xf32, #tpu.memory_space<smem>>
      memref.store %87, %arg4[%c3_58] : memref<5xf32, #tpu.memory_space<smem>>
      %c4_59 = arith.constant 4 : index
      %c0_60 = arith.constant 0 : index
      %c0_61 = arith.constant 0 : index
      %89 = vector.load %arg5[%c4_59, %c0_60, %c0_61] : memref<5x8x128xf32, #tpu.memory_space<vmem>>, vector<1x8x128xf32>
      %90 = vector.shape_cast %89 : vector<1x8x128xf32> to vector<8x128xf32>
      %91 = vector.shape_cast %90 : vector<8x128xf32> to vector<1x8x128xf32>
      %cst_62 = arith.constant dense<0.000000e+00> : vector<1xf32>
      %92 = vector.multi_reduction <add>, %91, %cst_62 [1, 2] : vector<1x8x128xf32> to vector<1xf32>
      %93 = vector.shape_cast %92 : vector<1xf32> to vector<1x1x1xf32>
      %94 = vector.extract %93[0, 0, 0] : f32 from vector<1x1x1xf32>
      %c4_63 = arith.constant 4 : index
      %95 = memref.load %arg4[%c4_63] : memref<5xf32, #tpu.memory_space<smem>>
      memref.store %94, %arg4[%c4_63] : memref<5xf32, #tpu.memory_space<smem>>
    } else {
    }
    return
  }
  func.func @transform_0(%arg0: i32) -> (i32, i32) {
    %c0_i32 = arith.constant 0 : i32
    %c0_i32_0 = arith.constant 0 : i32
    return %arg0, %c0_i32 : i32, i32
  }
  func.func @transform_1(%arg0: i32) -> (i32, i32) {
    %c0_i32 = arith.constant 0 : i32
    %c0_i32_0 = arith.constant 0 : i32
    return %arg0, %c0_i32 : i32, i32
  }
  func.func @transform_2(%arg0: i32) -> (i32, i32) {
    %c0_i32 = arith.constant 0 : i32
    %c0_i32_0 = arith.constant 0 : i32
    return %arg0, %c0_i32 : i32, i32
  }
  func.func @transform_3(%arg0: i32) -> i32 {
    %c0_i32 = arith.constant 0 : i32
    %c0_i32_0 = arith.constant 0 : i32
    return %c0_i32 : i32
  }
}

</mosaic_0001>

<bundles_post_ra>
// kernel: tpu_custom_call.1
= control target key start
LH: loop header
LB: loop body
LE: loop exit
PB: predicated region body
PF: predicated region fallthrough
CT: control target
= control target key end

     0   :  { %8 = vsyncpa [#allocation4], 0  ;;  %s344_s0 = inlined_call_operand.hbm [shape: f32[4,128], index: 0, kind: input, shape index: {}]   ;;  %s345_s1 = inlined_call_operand.hbm [shape: f32[4,128], index: 1, kind: input, shape index: {}]   ;;  %s346_s2 = inlined_call_operand.hbm [shape: f32[4,128], index: 2, kind: input, shape index: {}]   ;;  %s347_s3 = inlined_call_operand.hbm [shape: f32[5], index: 3, kind: output, shape index: {}]  }
   0x1   :  { %9 = vsyncpa [#allocation7], 0 }
   0x2   :  { %10 = vsyncpa [#allocation5], 0 }
   0x3   :  { %14 = vsyncadd [#allocation4], 192  ;;  %s15_s14 = sshll.u32 %s344_s0, 4  ;;  %s306_s15 = smov [#allocation3]   ;;  %s16_s14 = int_to_ptr.hbm [resolvable:$true] %s15_s14 }
   0x4   :  { %s17_s16 = sshll.u32 %s306_s15, 4  ;;  %s307_s17 = smov 64   ;;  %s18_s16 = int_to_ptr.vmem [resolvable:$true] %s17_s16 }
   0x5   :  { %s308_s18 = smov 4  }
   0x6   :  { %23 = dma.hbm_to_vmem [thread:$0]  %s16_s14, 64, %s18_s16, [#allocation4], %s307_s17, %s307_s17, %s308_s18  }
   0x7   :  { %27 = vsyncadd [#allocation7], 192  ;;  %s28_s21 = sshll.u32 %s345_s1, 4  ;;  %s309_s22 = smov [#allocation6]   ;;  %s29_s21 = int_to_ptr.hbm [resolvable:$true] %s28_s21 }
   0x8   :  { %s30_s23 = sshll.u32 %s309_s22, 4  ;;  %s31_s23 = int_to_ptr.vmem [resolvable:$true] %s30_s23 }
   0x9   :  { %36 = dma.hbm_to_vmem [thread:$0]  %s29_s21, 64, %s31_s23, [#allocation7], %s307_s17, %s307_s17, %s308_s18  }
   0xa   :  { %40 = vsyncadd [#allocation7], 192  ;;  %s41_s25 = sshll.u32 %s346_s2, 4  ;;  %s310_s26 = smov [#allocation8]   ;;  %s42_s25 = int_to_ptr.hbm [resolvable:$true] %s41_s25 }
   0xb   :  { %s43_s27 = sshll.u32 %s310_s26, 4  ;;  %s44_s27 = int_to_ptr.vmem [resolvable:$true] %s43_s27 }
   0xc   :  { %49 = dma.hbm_to_vmem [thread:$0]  %s42_s25, 64, %s44_s27, [#allocation7], %s307_s17, %s307_s17, %s308_s18  }
   0xd   :  { %300 = dma.done.wait [#allocation4], 256  }
   0xe   :  { %301 = vsyncadd [#allocation4], 4294967040 }
   0xf   :  { %302 = dma.done.wait [#allocation7], 512  }
  0x10   :  { %303 = vsyncadd [#allocation7], 4294966784  ;;  %v71_v0 = vlaneseq  ;;  %v84_v2 = vld [vmem:[#allocation6] sm:$0xff]  ;;  %v80_v3 = vld [vmem:[#allocation3] sm:$0xff]  ;;  %s188_s29 = sshll.u32 %s347_s3, 4  ;;  %s311_s7 = smov [#allocation9]   ;;  %s189_s29 = int_to_ptr.hbm [resolvable:$true] %s188_s29 }
  0x11   :  { %v88_v4 = vld [vmem:[#allocation8] sm:$0xff] }
  0x12   :  { %v72_v1 = vshrl.u32 %v71_v0, 7 }
  0x14   :  { %vm78_vm0 = vcmp.lt.s32.totalorder %v72_v1, 4 }
  0x15   :  { %v86_v5 = vsel %vm78_vm0, %v84_v2, 0.0  ;;  %v82_v6 = vsel %vm78_vm0, %v80_v3, 0.0  ;;  %v90_v7 = vsel %vm78_vm0, %v88_v4, 0.0 }
  0x16   :  { %148 = vadd.xlane.f32.xlu1 %v86_v5  ;;  %124 = vadd.xlane.f32.xlu0 %v82_v6  ;;  %v108_v8 = vmul.f32 %v90_v7, %v86_v5  ;;  %v96_v9 = vmul.f32 %v90_v7, %v82_v6 }
  0x17   :  { %172 = vadd.xlane.f32.xlu2 %v90_v7 }
  0x1e   :  { %160 = vadd.xlane.f32.xlu1 %v108_v8  ;;  %136 = vadd.xlane.f32.xlu0 %v96_v9 }
  0x89   :  { %v149_v10 = vpop.xlane.xlu1 %148  ;;  %v125_v11 = vpop.xlane.xlu0 %124 }
  0x8a   :  { %v150_v12 = vrot.slane %v149_v10, 4  ;;  %v126_v13 = vrot.slane %v125_v11, 4  ;;  %v173_v14 = vpop.xlane.xlu2 %172 }
  0x8b   :  { %v174_v15 = vrot.slane %v173_v14, 4 }
  0x8c   :  { %v127_v16 = vadd.f32 %v126_v13, %v125_v11  ;;  %v151_v17 = vadd.f32 %v150_v12, %v149_v10 }
  0x8d   :  { %v175_v19 = vadd.f32 %v174_v15, %v173_v14 }
  0x8e   :  { %v128_v18 = vrot.slane %v127_v16, 2  ;;  %v152_v21 = vrot.slane %v151_v17, 2 }
  0x8f   :  { %v176_v27 = vrot.slane %v175_v19, 2 }
  0x90   :  { %v129_v20 = vadd.f32 %v128_v18, %v127_v16  ;;  %v153_v31 = vadd.f32 %v152_v21, %v151_v17 }
  0x91   :  { %v161_v22 = vpop.xlane.xlu1 %160  ;;  %v137_v23 = vpop.xlane.xlu0 %136  ;;  %v177_v34 = vadd.f32 %v176_v27, %v175_v19 }
  0x92   :  { %v162_v24 = vrot.slane %v161_v22, 4  ;;  %v138_v25 = vrot.slane %v137_v23, 4  ;;  %v130_v26 = vrot.slane %v129_v20, 1  ;;  %v154_v37 = vrot.slane %v153_v31, 1 }
  0x93   :  { %v178_v40 = vrot.slane %v177_v34, 1 }
  0x94   :  { %v163_v28 = vadd.f32 %v162_v24, %v161_v22  ;;  %v139_v29 = vadd.f32 %v138_v25, %v137_v23  ;;  %v131_v30 = vadd.f32 %v130_v26, %v129_v20  ;;  %v155_v43 = vadd.f32 %v154_v37, %v153_v31 }
  0x95   :  { %v179_v44 = vadd.f32 %v178_v40, %v177_v34 }
  0x96   :  { %v164_v32 = vrot.slane %v163_v28, 2  ;;  %v140_v33 = vrot.slane %v139_v29, 2  ;;  %200 = vpush %v131_v30 }
  0x98   :  { %v165_v35 = vadd.f32 %v164_v32, %v163_v28  ;;  %v141_v36 = vadd.f32 %v140_v33, %v139_v29 }
  0x9a   :  { %v142_v38 = vrot.slane %v141_v36, 1  ;;  %v166_v39 = vrot.slane %v165_v35, 1 }
  0x9c   :  { %v143_v41 = vadd.f32 %v142_v38, %v141_v36  ;;  %v167_v42 = vadd.f32 %v166_v39, %v165_v35 }
  0x9e   :  { %202 = vpush %v143_v41 }
  0x9f   :  { %204 = vpush %v155_v43 }
  0xa0   :  { %206 = vpush %v167_v42 }
  0xa1   :  { %208 = vpush %v179_v44 }
  0xc7   :  { %s201_s1 = spop %200 }
  0xc8   :  { %134 = sst [smem:[#allocation9]] %s201_s1 }
  0xcf   :  { %s203_s30 = spop %202 }
  0xd0   :  { %146 = sst [smem:[#allocation9 + $0x1]] %s203_s30  ;;  %s205_s4 = spop %204 }
  0xd1   :  { %158 = sst [smem:[#allocation9 + $0x2]] %s205_s4  ;;  %s207_s5 = spop %206 }
  0xd2   :  { %170 = sst [smem:[#allocation9 + $0x3]] %s207_s5  ;;  %s209_s6 = spop %208 }
  0xd3   :  { %182 = sst [smem:[#allocation9 + $0x4]] %s209_s6 }
  0xd4   :  { %191 = dma.smem_to_hbm %s311_s7, 16, %s189_s29, [#allocation5]  }
  0xd5   :  { %304 = dma.done.wait [#allocation5], 16  }
  0xd6   :  { %305 = vsyncadd [#allocation5], 4294967280 }
  0xd7   :  { %196 = sfence }
  0xd8   :  { %197 = vsyncpa [#allocation4], 1 }
  0xd9   :  { %198 = vsyncpa [#allocation7], 1 }
  0xda   :  { %199 = vsyncpa [#allocation5], 1 }

</bundles_post_ra>
